<compile_context>
chip_gen: v7x
topology: tpu7x:2x2x1
jax: 0.10.0
libtpu: 0.0.40
codegen_flags: <defaults>
</compile_context>

<pallas_src>
import jax
import jax.numpy as jnp
from jax.experimental import pallas as pl
from jax.experimental.pallas import tpu as pltpu

_NQ = 5  # accumulated quantities: bce_sum, sig*t0, sig_sum, t0_sum, lung_sum


def _make_kernel(tile_h, blocks_per_split, h_total, needs_mask):
    def kernel(logits_ref, tgt0_ref, tgt1_ref, partials_ref, acc_ref):
        k = pl.program_id(1)

        @pl.when(k == 0)
        def _init():
            acc_ref[...] = jnp.zeros_like(acc_ref)

        # Blocks are (N, 1, TILE_H, W); drop the singleton channel axis (free reshape).
        x = jnp.squeeze(logits_ref[...], axis=1).astype(jnp.float32)   # disease logits
        t0 = jnp.squeeze(tgt0_ref[...], axis=1).astype(jnp.float32)    # disease target
        t1 = jnp.squeeze(tgt1_ref[...], axis=1).astype(jnp.float32)    # lung target

        if needs_mask:
            # Rows past H (partial last tile / overshoot blocks of the core split)
            # must contribute exactly zero.  Zero x/t0/t1 first so any garbage in the
            # padded block region (NaN/Inf) cannot propagate.
            hb = pl.program_id(0) * blocks_per_split + k               # logical H block
            row = hb * tile_h + jax.lax.broadcasted_iota(jnp.int32, x.shape, 1)
            valid = row < h_total
            fmask = valid.astype(jnp.float32)
            x = jnp.where(valid, x, 0.0)
            t0 = jnp.where(valid, t0, 0.0)
            t1 = jnp.where(valid, t1, 0.0)

        # One exp(-|x|) per element, shared by BCE-with-logits and the sigmoid.
        e = jnp.exp(-jnp.abs(x))                                       # in (0, 1]
        log_term = jnp.log(1.0 + e)                                    # == log1p(e) to ~1 ulp here
        bce_elem = jnp.maximum(x, 0.0) - x * t0 + log_term
        # Stable sigmoid from the same exp; the exact divide lowers to recip + Newton on
        # the VPU, keeping the EUP at ~2 transcendentals/element.
        sig = jnp.where(x >= 0.0, 1.0, e) / (1.0 + e)
        # sigmoid(x) > 0.5  <=>  x > 0 : compare raw logits (no dependence on `sig`).
        disease = (x > 0.0).astype(jnp.float32)
        lung_elem = jnp.maximum(disease - t1, 0.0)                     # 0 in masked region

        if needs_mask:
            bce_elem = bce_elem * fmask
            sig = sig * fmask                                          # sig=0.5 in pad -> 0

        # Per tile: reduce only over the H (sublane) axis; lane reduce deferred to finalize.
        acc_ref[0] = acc_ref[0] + jnp.sum(bce_elem, axis=1)            # (N, W)
        acc_ref[1] = acc_ref[1] + jnp.sum(sig * t0, axis=1)
        acc_ref[2] = acc_ref[2] + jnp.sum(sig, axis=1)
        acc_ref[3] = acc_ref[3] + jnp.sum(t0, axis=1)
        acc_ref[4] = acc_ref[4] + jnp.sum(lung_elem, axis=1)

        @pl.when(k == pl.num_programs(1) - 1)
        def _finalize():
            # Single cross-lane reduce + single small store per core split.
            partials_ref[0] = jnp.sum(acc_ref[...], axis=2)            # (5, N)

    return kernel


def bce_dice_lung_loss(output, target, sub_dataset="disease"):
    """output, target: (N, C, H, W) arrays (logits / {0,1} targets). Returns scalar loss."""
    # TODO(synk): only the default sub_dataset='disease' branch is implemented; the
    # all-channel branch would run the same kernel over every channel's (N, H, W) slab.
    assert sub_dataset == "disease"
    N, C, H, W = output.shape
    assert target.shape == output.shape and C >= 2

    # --- tile sizing: ~2 MiB (f32-equivalent) per input block, H rows multiple of 8 ---
    target_rows = max(1, (512 * 1024) // (N * W))
    if target_rows >= H:
        tile_h = H
    else:
        tile_h = max(8, (target_rows // 8) * 8)
    num_hb = -(-H // tile_h)

    # Leading "parallel" axis: dual-TensorCore chips (v7x) split the H range across
    # cores; single-core chips just run it sequentially (negligible overhead).
    n_split = 2 if num_hb >= 2 else 1
    blocks_per_split = -(-num_hb // n_split)
    needs_mask = (n_split * blocks_per_split * tile_h) != H

    itemsize = max(jnp.dtype(output.dtype).itemsize, jnp.dtype(target.dtype).itemsize)
    block_bytes = N * tile_h * W * itemsize
    # 3 inputs x 2 pipeline buffers + accumulators + slack; never below 32 MiB (safe
    # scoped limit on v5e/v6e/v7x).
    vmem_limit = max(32 * 1024 * 1024, 8 * block_bytes + 2 * 1024 * 1024)

    def _hblk(c, k):
        # Clamp so overshoot blocks of the core split stay in bounds; their contribution
        # is zeroed by the in-kernel row mask (computed from the unclamped index).
        return jnp.minimum(c * blocks_per_split + k, num_hb - 1)

    in_block = (N, 1, tile_h, W)

    partials = pl.pallas_call(
        _make_kernel(tile_h, blocks_per_split, H, needs_mask),
        out_shape=jax.ShapeDtypeStruct((n_split, _NQ, N), jnp.float32),
        grid=(n_split, blocks_per_split),
        in_specs=[
            pl.BlockSpec(in_block, lambda c, k: (0, 0, _hblk(c, k), 0)),  # output, channel 0
            pl.BlockSpec(in_block, lambda c, k: (0, 0, _hblk(c, k), 0)),  # target, channel 0
            pl.BlockSpec(in_block, lambda c, k: (0, 1, _hblk(c, k), 0)),  # target, channel 1
        ],
        out_specs=pl.BlockSpec((1, _NQ, N), lambda c, k: (c, 0, 0)),
        scratch_shapes=[pltpu.VMEM((_NQ, N, W), jnp.float32)],
        compiler_params=pltpu.CompilerParams(
            dimension_semantics=("parallel", "arbitrary"),
            vmem_limit_bytes=int(vmem_limit),
        ),
    )(output, target, target)

    # Tiny finalize in plain JAX on the per-core partial sums.
    p = jnp.sum(partials, axis=0)                     # (5, N)
    bce_n, inter_n, sig_n, t0_n, lung_n = p[0], p[1], p[2], p[3], p[4]
    n_elem = jnp.float32(N * H * W)
    smooth = jnp.float32(1e-5)
    bce = jnp.sum(bce_n) / n_elem
    dice_per = (2.0 * inter_n + smooth) / (sig_n + t0_n + smooth)
    dice = 1.0 - jnp.sum(dice_per) / jnp.float32(N)
    lung = jnp.sum(lung_n) / n_elem
    return 0.5 * bce + dice + 0.2 * lung


def _reference_loss(output, target):
    # Pure-JAX reference mirroring the PyTorch module, for a sanity check.
    N = output.shape[0]
    x = output[:, 0].reshape(N, -1).astype(jnp.float32)
    t0 = target[:, 0].reshape(N, -1).astype(jnp.float32)
    t1 = target[:, 1].reshape(N, -1).astype(jnp.float32)
    bce = jnp.mean(jnp.maximum(x, 0.0) - x * t0 + jnp.log1p(jnp.exp(-jnp.abs(x))))
    sig = jax.nn.sigmoid(x)
    smooth = 1e-5
    dice = (2.0 * jnp.sum(sig * t0, axis=1) + smooth) / (
        jnp.sum(sig, axis=1) + jnp.sum(t0, axis=1) + smooth)
    dice = 1.0 - jnp.sum(dice) / N
    lung = jnp.mean(jnp.maximum((sig > 0.5).astype(jnp.float32) - t1, 0.0))
    return 0.5 * bce + dice + 0.2 * lung


if __name__ == "__main__":
    key = jax.random.PRNGKey(0)
    k1, k2 = jax.random.split(key)
    N, C, H, W = 2, 4, 16, 16
    output = jax.random.normal(k1, (N, C, H, W), dtype=jnp.float32)          # logits
    target = (jax.random.uniform(k2, (N, C, H, W)) > 0.5).astype(jnp.float32)

    loss = bce_dice_lung_loss(output, target)
    loss = jax.block_until_ready(loss)

    ref = _reference_loss(output, target)
    assert jnp.allclose(loss, ref, rtol=1e-4, atol=1e-4), (loss, ref)
    print("KERNEL_OK")
</pallas_src>

<mosaic_0001>
module attributes {stable_mosaic.version = 11 : i64} {
  func.func @kernel(%arg0: i32, %arg1: i32, %arg2: memref<2x1x16x16xf32, #tpu.memory_space<vmem>>, %arg3: memref<2x1x16x16xf32, #tpu.memory_space<vmem>>, %arg4: memref<2x1x16x16xf32, #tpu.memory_space<vmem>>, %arg5: memref<1x5x2xf32, #tpu.memory_space<vmem>>, %arg6: memref<5x2x16xf32, #tpu.memory_space<vmem>>) attributes {dimension_semantics = [#tpu.dimension_semantics<parallel>, #tpu.dimension_semantics<arbitrary>], iteration_bounds = array<i64: 1, 1>, scalar_prefetch = 0 : i64, scratch_operands = 1 : i64, tpu.core_type = #tpu.core_type<tc>, window_params = [{transform_indices = @transform_0, window_bounds = array<i64: 2, 1, 16, 16>}, {transform_indices = @transform_1, window_bounds = array<i64: 2, 1, 16, 16>}, {transform_indices = @transform_2, window_bounds = array<i64: 2, 1, 16, 16>}, {transform_indices = @transform_3, window_bounds = array<i64: 1, 5, 2>}]} {
    %c0_i32 = arith.constant 0 : i32
    %0 = arith.cmpi eq, %arg1, %c0_i32 : i32
    %1 = arith.extui %0 : i1 to i32
    %c0_i32_0 = arith.constant 0 : i32
    %2 = arith.cmpi ne, %1, %c0_i32_0 : i32
    scf.if %2 {
      %cst_52 = arith.constant 0.000000e+00 : f32
      %74 = vector.broadcast %cst_52 : f32 to vector<5x2x16xf32>
      %c0_53 = arith.constant 0 : index
      %c0_54 = arith.constant 0 : index
      %c0_55 = arith.constant 0 : index
      %75 = vector.load %arg6[%c0_53, %c0_54, %c0_55] : memref<5x2x16xf32, #tpu.memory_space<vmem>>, vector<5x2x16xf32>
      tpu.vector_store %arg6[%c0_53, %c0_54, %c0_55], %74 {strides = array<i32>} : memref<5x2x16xf32, #tpu.memory_space<vmem>>, vector<5x2x16xf32>,
    } else {
    }
    %c0 = arith.constant 0 : index
    %c0_1 = arith.constant 0 : index
    %c0_2 = arith.constant 0 : index
    %c0_3 = arith.constant 0 : index
    %3 = vector.load %arg2[%c0, %c0_1, %c0_2, %c0_3] : memref<2x1x16x16xf32, #tpu.memory_space<vmem>>, vector<2x1x16x16xf32>
    %4 = vector.shape_cast %3 : vector<2x1x16x16xf32> to vector<2x16x16xf32>
    %c0_4 = arith.constant 0 : index
    %c0_5 = arith.constant 0 : index
    %c0_6 = arith.constant 0 : index
    %c0_7 = arith.constant 0 : index
    %5 = vector.load %arg3[%c0_4, %c0_5, %c0_6, %c0_7] : memref<2x1x16x16xf32, #tpu.memory_space<vmem>>, vector<2x1x16x16xf32>
    %6 = vector.shape_cast %5 : vector<2x1x16x16xf32> to vector<2x16x16xf32>
    %c0_8 = arith.constant 0 : index
    %c0_9 = arith.constant 0 : index
    %c0_10 = arith.constant 0 : index
    %c0_11 = arith.constant 0 : index
    %7 = vector.load %arg4[%c0_8, %c0_9, %c0_10, %c0_11] : memref<2x1x16x16xf32, #tpu.memory_space<vmem>>, vector<2x1x16x16xf32>
    %8 = vector.shape_cast %7 : vector<2x1x16x16xf32> to vector<2x16x16xf32>
    %9 = math.absf %4 : vector<2x16x16xf32>
    %cst = arith.constant 0.000000e+00 : f32
    %10 = vector.broadcast %cst : f32 to vector<2x16x16xf32>
    %11 = arith.subf %10, %9 : vector<2x16x16xf32>
    %12 = math.exp %11 : vector<2x16x16xf32>
    %cst_12 = arith.constant 1.000000e+00 : f32
    %13 = vector.broadcast %cst_12 : f32 to vector<2x16x16xf32>
    %14 = arith.addf %13, %12 : vector<2x16x16xf32>
    %15 = math.log %14 : vector<2x16x16xf32>
    %cst_13 = arith.constant 0.000000e+00 : f32
    %16 = vector.broadcast %cst_13 : f32 to vector<2x16x16xf32>
    %17 = arith.maximumf %4, %16 : vector<2x16x16xf32>
    %18 = arith.mulf %4, %6 : vector<2x16x16xf32>
    %19 = arith.subf %17, %18 : vector<2x16x16xf32>
    %20 = arith.addf %19, %15 : vector<2x16x16xf32>
    %cst_14 = arith.constant 0.000000e+00 : f32
    %21 = vector.broadcast %cst_14 : f32 to vector<2x16x16xf32>
    %22 = arith.cmpf oge, %4, %21 : vector<2x16x16xf32>
    %cst_15 = arith.constant 1.000000e+00 : f32
    %23 = vector.broadcast %cst_15 : f32 to vector<2x16x16xf32>
    %24 = arith.select %22, %23, %12 : vector<2x16x16xi1>, vector<2x16x16xf32>
    %cst_16 = arith.constant 1.000000e+00 : f32
    %25 = vector.broadcast %cst_16 : f32 to vector<2x16x16xf32>
    %26 = arith.addf %25, %12 : vector<2x16x16xf32>
    %27 = arith.divf %24, %26 : vector<2x16x16xf32>
    %cst_17 = arith.constant 0.000000e+00 : f32
    %28 = vector.broadcast %cst_17 : f32 to vector<2x16x16xf32>
    %29 = arith.cmpf ogt, %4, %28 : vector<2x16x16xf32>
    %30 = arith.extui %29 : vector<2x16x16xi1> to vector<2x16x16xi32>
    %31 = arith.sitofp %30 : vector<2x16x16xi32> to vector<2x16x16xf32>
    %32 = arith.subf %31, %8 : vector<2x16x16xf32>
    %cst_18 = arith.constant 0.000000e+00 : f32
    %33 = vector.broadcast %cst_18 : f32 to vector<2x16x16xf32>
    %34 = arith.maximumf %32, %33 : vector<2x16x16xf32>
    %c0_19 = arith.constant 0 : index
    %c0_20 = arith.constant 0 : index
    %c0_21 = arith.constant 0 : index
    %35 = vector.load %arg6[%c0_19, %c0_20, %c0_21] : memref<5x2x16xf32, #tpu.memory_space<vmem>>, vector<1x2x16xf32>
    %36 = vector.shape_cast %35 : vector<1x2x16xf32> to vector<2x16xf32>
    %cst_22 = arith.constant dense<0.000000e+00> : vector<2x16xf32>
    %37 = vector.multi_reduction <add>, %20, %cst_22 [1] : vector<2x16x16xf32> to vector<2x16xf32>
    %38 = arith.addf %36, %37 : vector<2x16xf32>
    %c0_23 = arith.constant 0 : index
    %c0_24 = arith.constant 0 : index
    %c0_25 = arith.constant 0 : index
    %39 = vector.load %arg6[%c0_23, %c0_24, %c0_25] : memref<5x2x16xf32, #tpu.memory_space<vmem>>, vector<1x2x16xf32>
    %40 = vector.shape_cast %39 : vector<1x2x16xf32> to vector<2x16xf32>
    %41 = vector.shape_cast %38 : vector<2x16xf32> to vector<1x2x16xf32>
    tpu.vector_store %arg6[%c0_23, %c0_24, %c0_25], %41 {strides = array<i32>} : memref<5x2x16xf32, #tpu.memory_space<vmem>>, vector<1x2x16xf32>,
    %c1 = arith.constant 1 : index
    %c0_26 = arith.constant 0 : index
    %c0_27 = arith.constant 0 : index
    %42 = vector.load %arg6[%c1, %c0_26, %c0_27] : memref<5x2x16xf32, #tpu.memory_space<vmem>>, vector<1x2x16xf32>
    %43 = vector.shape_cast %42 : vector<1x2x16xf32> to vector<2x16xf32>
    %44 = arith.mulf %27, %6 : vector<2x16x16xf32>
    %cst_28 = arith.constant dense<0.000000e+00> : vector<2x16xf32>
    %45 = vector.multi_reduction <add>, %44, %cst_28 [1] : vector<2x16x16xf32> to vector<2x16xf32>
    %46 = arith.addf %43, %45 : vector<2x16xf32>
    %c1_29 = arith.constant 1 : index
    %c0_30 = arith.constant 0 : index
    %c0_31 = arith.constant 0 : index
    %47 = vector.load %arg6[%c1_29, %c0_30, %c0_31] : memref<5x2x16xf32, #tpu.memory_space<vmem>>, vector<1x2x16xf32>
    %48 = vector.shape_cast %47 : vector<1x2x16xf32> to vector<2x16xf32>
    %49 = vector.shape_cast %46 : vector<2x16xf32> to vector<1x2x16xf32>
    tpu.vector_store %arg6[%c1_29, %c0_30, %c0_31], %49 {strides = array<i32>} : memref<5x2x16xf32, #tpu.memory_space<vmem>>, vector<1x2x16xf32>,
    %c2 = arith.constant 2 : index
    %c0_32 = arith.constant 0 : index
    %c0_33 = arith.constant 0 : index
    %50 = vector.load %arg6[%c2, %c0_32, %c0_33] : memref<5x2x16xf32, #tpu.memory_space<vmem>>, vector<1x2x16xf32>
    %51 = vector.shape_cast %50 : vector<1x2x16xf32> to vector<2x16xf32>
    %cst_34 = arith.constant dense<0.000000e+00> : vector<2x16xf32>
    %52 = vector.multi_reduction <add>, %27, %cst_34 [1] : vector<2x16x16xf32> to vector<2x16xf32>
    %53 = arith.addf %51, %52 : vector<2x16xf32>
    %c2_35 = arith.constant 2 : index
    %c0_36 = arith.constant 0 : index
    %c0_37 = arith.constant 0 : index
    %54 = vector.load %arg6[%c2_35, %c0_36, %c0_37] : memref<5x2x16xf32, #tpu.memory_space<vmem>>, vector<1x2x16xf32>
    %55 = vector.shape_cast %54 : vector<1x2x16xf32> to vector<2x16xf32>
    %56 = vector.shape_cast %53 : vector<2x16xf32> to vector<1x2x16xf32>
    tpu.vector_store %arg6[%c2_35, %c0_36, %c0_37], %56 {strides = array<i32>} : memref<5x2x16xf32, #tpu.memory_space<vmem>>, vector<1x2x16xf32>,
    %c3 = arith.constant 3 : index
    %c0_38 = arith.constant 0 : index
    %c0_39 = arith.constant 0 : index
    %57 = vector.load %arg6[%c3, %c0_38, %c0_39] : memref<5x2x16xf32, #tpu.memory_space<vmem>>, vector<1x2x16xf32>
    %58 = vector.shape_cast %57 : vector<1x2x16xf32> to vector<2x16xf32>
    %cst_40 = arith.constant dense<0.000000e+00> : vector<2x16xf32>
    %59 = vector.multi_reduction <add>, %6, %cst_40 [1] : vector<2x16x16xf32> to vector<2x16xf32>
    %60 = arith.addf %58, %59 : vector<2x16xf32>
    %c3_41 = arith.constant 3 : index
    %c0_42 = arith.constant 0 : index
    %c0_43 = arith.constant 0 : index
    %61 = vector.load %arg6[%c3_41, %c0_42, %c0_43] : memref<5x2x16xf32, #tpu.memory_space<vmem>>, vector<1x2x16xf32>
    %62 = vector.shape_cast %61 : vector<1x2x16xf32> to vector<2x16xf32>
    %63 = vector.shape_cast %60 : vector<2x16xf32> to vector<1x2x16xf32>
    tpu.vector_store %arg6[%c3_41, %c0_42, %c0_43], %63 {strides = array<i32>} : memref<5x2x16xf32, #tpu.memory_space<vmem>>, vector<1x2x16xf32>,
    %c4 = arith.constant 4 : index
    %c0_44 = arith.constant 0 : index
    %c0_45 = arith.constant 0 : index
    %64 = vector.load %arg6[%c4, %c0_44, %c0_45] : memref<5x2x16xf32, #tpu.memory_space<vmem>>, vector<1x2x16xf32>
    %65 = vector.shape_cast %64 : vector<1x2x16xf32> to vector<2x16xf32>
    %cst_46 = arith.constant dense<0.000000e+00> : vector<2x16xf32>
    %66 = vector.multi_reduction <add>, %34, %cst_46 [1] : vector<2x16x16xf32> to vector<2x16xf32>
    %67 = arith.addf %65, %66 : vector<2x16xf32>
    %c4_47 = arith.constant 4 : index
    %c0_48 = arith.constant 0 : index
    %c0_49 = arith.constant 0 : index
    %68 = vector.load %arg6[%c4_47, %c0_48, %c0_49] : memref<5x2x16xf32, #tpu.memory_space<vmem>>, vector<1x2x16xf32>
    %69 = vector.shape_cast %68 : vector<1x2x16xf32> to vector<2x16xf32>
    %70 = vector.shape_cast %67 : vector<2x16xf32> to vector<1x2x16xf32>
    tpu.vector_store %arg6[%c4_47, %c0_48, %c0_49], %70 {strides = array<i32>} : memref<5x2x16xf32, #tpu.memory_space<vmem>>, vector<1x2x16xf32>,
    %c0_i32_50 = arith.constant 0 : i32
    %71 = arith.cmpi eq, %arg1, %c0_i32_50 : i32
    %72 = arith.extui %71 : i1 to i32
    %c0_i32_51 = arith.constant 0 : i32
    %73 = arith.cmpi ne, %72, %c0_i32_51 : i32
    scf.if %73 {
      %c0_52 = arith.constant 0 : index
      %c0_53 = arith.constant 0 : index
      %c0_54 = arith.constant 0 : index
      %74 = vector.load %arg6[%c0_52, %c0_53, %c0_54] : memref<5x2x16xf32, #tpu.memory_space<vmem>>, vector<5x2x16xf32>
      %cst_55 = arith.constant dense<0.000000e+00> : vector<5x2xf32>
      %75 = vector.multi_reduction <add>, %74, %cst_55 [2] : vector<5x2x16xf32> to vector<5x2xf32>
      %c0_56 = arith.constant 0 : index
      %c0_57 = arith.constant 0 : index
      %c0_58 = arith.constant 0 : index
      %76 = vector.load %arg5[%c0_56, %c0_57, %c0_58] : memref<1x5x2xf32, #tpu.memory_space<vmem>>, vector<1x5x2xf32>
      %77 = vector.shape_cast %76 : vector<1x5x2xf32> to vector<5x2xf32>
      %78 = vector.shape_cast %75 : vector<5x2xf32> to vector<1x5x2xf32>
      tpu.vector_store %arg5[%c0_56, %c0_57, %c0_58], %78 {strides = array<i32>} : memref<1x5x2xf32, #tpu.memory_space<vmem>>, vector<1x5x2xf32>,
    } else {
    }
    return
  }
  func.func @transform_0(%arg0: i32, %arg1: i32) -> (i32, i32, i32, i32) {
    %c1_i32 = arith.constant 1 : i32
    %0 = arith.muli %arg0, %c1_i32 : i32
    %1 = arith.addi %0, %arg1 : i32
    %c0_i32 = arith.constant 0 : i32
    %2 = arith.minsi %1, %c0_i32 : i32
    %c0_i32_0 = arith.constant 0 : i32
    %c0_i32_1 = arith.constant 0 : i32
    %c0_i32_2 = arith.constant 0 : i32
    %c0_i32_3 = arith.constant 0 : i32
    return %c0_i32_0, %c0_i32_1, %2, %c0_i32_2 : i32, i32, i32, i32
  }
  func.func @transform_1(%arg0: i32, %arg1: i32) -> (i32, i32, i32, i32) {
    %c1_i32 = arith.constant 1 : i32
    %0 = arith.muli %arg0, %c1_i32 : i32
    %1 = arith.addi %0, %arg1 : i32
    %c0_i32 = arith.constant 0 : i32
    %2 = arith.minsi %1, %c0_i32 : i32
    %c0_i32_0 = arith.constant 0 : i32
    %c0_i32_1 = arith.constant 0 : i32
    %c0_i32_2 = arith.constant 0 : i32
    %c0_i32_3 = arith.constant 0 : i32
    return %c0_i32_0, %c0_i32_1, %2, %c0_i32_2 : i32, i32, i32, i32
  }
  func.func @transform_2(%arg0: i32, %arg1: i32) -> (i32, i32, i32, i32) {
    %c1_i32 = arith.constant 1 : i32
    %0 = arith.muli %arg0, %c1_i32 : i32
    %1 = arith.addi %0, %arg1 : i32
    %c0_i32 = arith.constant 0 : i32
    %2 = arith.minsi %1, %c0_i32 : i32
    %c0_i32_0 = arith.constant 0 : i32
    %c1_i32_1 = arith.constant 1 : i32
    %c0_i32_2 = arith.constant 0 : i32
    %c0_i32_3 = arith.constant 0 : i32
    return %c0_i32_0, %c1_i32_1, %2, %c0_i32_2 : i32, i32, i32, i32
  }
  func.func @transform_3(%arg0: i32, %arg1: i32) -> (i32, i32, i32) {
    %c0_i32 = arith.constant 0 : i32
    %c0_i32_0 = arith.constant 0 : i32
    %c0_i32_1 = arith.constant 0 : i32
    return %arg0, %c0_i32, %c0_i32_0 : i32, i32, i32
  }
}

</mosaic_0001>

<bundles_post_ra>
// kernel: tpu_custom_call.1
= control target key start
LH: loop header
LB: loop body
LE: loop exit
PB: predicated region body
PF: predicated region fallthrough
CT: control target
= control target key end

     0   :  { %8 = vsyncpa [#allocation4], 0  ;;  %s698_s0 = inlined_call_operand.hbm [shape: f32[2,4,16,16], index: 0, kind: input, shape index: {}]   ;;  %s699_s1 = inlined_call_operand.hbm [shape: f32[2,4,16,16], index: 1, kind: input, shape index: {}]   ;;  %s700_s2 = inlined_call_operand.hbm [shape: f32[2,4,16,16], index: 2, kind: input, shape index: {}]   ;;  %s701_s3 = inlined_call_operand.vmem [shape: f32[1,5,2], index: 3, kind: output, shape index: {}]  }
   0x1   :  { %9 = vsyncpa [#allocation6], 0 }
   0x2   :  { %s25_s12 = sld [smem:[#allocation0]]   ;;  %s536_s13 = smov [#allocation3]  }
   0x3   :  { %s33_s14 = sshll.u32 %s536_s13, 4  ;;  %s537_s15 = smov 1024   ;;  %s34_s14 = int_to_ptr.vmem [resolvable:$true] %s33_s14 }
   0x4   :  { %40 = sst [smem:[#allocation9]] %s537_s15  ;;  %s538_s16 = smov 256  }
   0x5   :  { %42 = sst [smem:[#allocation9 + $0x1]] %s538_s16  ;;  %s539_s17 = smov 2  }
   0x6   :  { %44 = sst [smem:[#allocation9 + $0x2]] %s539_s17  ;;  %s540_s19 = smov 128  }
   0x7   :  { %46 = sst [smem:[#allocation9 + $0x3]] %s540_s19  ;;  %s541_s21 = smov 8  }
   0x8   :  { %s473_s18 = sshll.u32 %s25_s12, 26  ;;  %48 = sst [smem:[#allocation9 + $0x4]] %s540_s19 }
   0x9   :  { %s474_s20 = sadd.s32 134217728, %s473_s18  ;;  %50 = sst [smem:[#allocation9 + $0x5]] %s541_s21 }
   0xa   :  { %s542_s22 = smov [#allocation4]   ;;  %s543_s23 = smov [#allocation8]  }
   0xb   :  { %52 = dma.general %s698_s0, 512, %s34_s14, %s542_s22, %s543_s23, [#allocation9], %s474_s20, 0  }
   0xc   :  { %s68_s26 = sld [smem:[#allocation0]]   ;;  %s544_s27 = smov [#allocation5]  }
   0xd   :  { %s76_s28 = sshll.u32 %s544_s27, 4  ;;  %s545_s29 = smov 1024   ;;  %s77_s28 = int_to_ptr.vmem [resolvable:$true] %s76_s28 }
   0xe   :  { %83 = sst [smem:[#allocation11]] %s545_s29  ;;  %s546_s30 = smov 256  }
   0xf   :  { %85 = sst [smem:[#allocation11 + $0x1]] %s546_s30  ;;  %s547_s4 = smov 2  }
  0x10   :  { %87 = sst [smem:[#allocation11 + $0x2]] %s547_s4  ;;  %s548_s6 = smov 128  }
  0x11   :  { %89 = sst [smem:[#allocation11 + $0x3]] %s548_s6  ;;  %s549_s8 = smov 8  }
  0x12   :  { %s475_s5 = sshll.u32 %s68_s26, 26  ;;  %91 = sst [smem:[#allocation11 + $0x4]] %s548_s6 }
  0x13   :  { %s476_s7 = sadd.s32 134217728, %s475_s5  ;;  %93 = sst [smem:[#allocation11 + $0x5]] %s549_s8 }
  0x14   :  { %s550_s9 = smov [#allocation6]   ;;  %s551_s10 = smov [#allocation10]  }
  0x15   :  { %95 = dma.general %s699_s1, 512, %s77_s28, %s550_s9, %s551_s10, [#allocation11], %s476_s7, 0  }
  0x16   :  { %s472_s14 = scalar_lea.hbm %s700_s2, 256  ;;  %s112_s15 = sld [smem:[#allocation0]]  }
  0x17   :  { %s552_s16 = smov [#allocation7]   ;;  %s553_s18 = smov 1024  }
  0x18   :  { %s120_s17 = sshll.u32 %s552_s16, 4  ;;  %127 = sst [smem:[#allocation13]] %s553_s18  ;;  %s121_s17 = int_to_ptr.vmem [resolvable:$true] %s120_s17 }
  0x19   :  { %s554_s19 = smov 256   ;;  %s555_s20 = smov 2  }
  0x1a   :  { %129 = sst [smem:[#allocation13 + $0x1]] %s554_s19  ;;  %s556_s22 = smov 128  }
  0x1b   :  { %131 = sst [smem:[#allocation13 + $0x2]] %s555_s20  ;;  %s557_s1 = smov 8  }
  0x1c   :  { %s477_s21 = sshll.u32 %s112_s15, 26  ;;  %133 = sst [smem:[#allocation13 + $0x3]] %s556_s22 }
  0x1d   :  { %s478_s23 = sadd.s32 134217728, %s477_s21  ;;  %135 = sst [smem:[#allocation13 + $0x4]] %s556_s22 }
  0x1e   :  { %137 = sst [smem:[#allocation13 + $0x5]] %s557_s1  ;;  %s558_s24 = smov [#allocation6]  }
  0x1f   :  { %s559_s25 = smov [#allocation12]  }
  0x20   :  { %139 = dma.general %s472_s14, 512, %s121_s17, %s558_s24, %s559_s25, [#allocation13], %s478_s23, 0  }
  0x21   :  { %532 = dma.done.wait [#allocation4], 512  }
  0x22   :  { %533 = vsyncadd [#allocation4], 4294966784 }
  0x23   :  { %534 = dma.done.wait [#allocation6], 1024  }
  0x24   :  { %535 = vsyncadd [#allocation6], 4294966272  ;;  %vm165_vm0 = vcmask 123904   ;;  %v560_v0 = vmov 0.0   ;;  %v595_v1 = vld [vmem:[#allocation3] sm:$0xff]  ;;  %v597_v2 = vld [vmem:[#allocation3 + $0x8] sm:$0xff] }
  0x25   :  { %166 = vst.msk [vmem:[#allocation2] sm:$0x3] %vm165_vm0, %v560_v0  ;;  %167 = vst.msk [vmem:[#allocation2 + $0x2] sm:$0x3] %vm165_vm0, %v560_v0  ;;  %v599_v3 = vld [vmem:[#allocation3 + $0x10] sm:$0xff]  ;;  %v601_v4 = vld [vmem:[#allocation3 + $0x18] sm:$0xff] }
  0x26   :  { %168 = vst.msk [vmem:[#allocation2 + $0x4] sm:$0x3] %vm165_vm0, %v560_v0  ;;  %169 = vst.msk [vmem:[#allocation2 + $0x6] sm:$0x3] %vm165_vm0, %v560_v0  ;;  %v183_v5 = vand.u32 2147483647, %v595_v1 }
  0x27   :  { %170 = vst.msk [vmem:[#allocation2 + $0x8] sm:$0x3] %vm165_vm0, %v560_v0  ;;  %v184_v6 = vand.u32 2147483647, %v597_v2  ;;  %v185_v7 = vand.u32 2147483647, %v599_v3 }
  0x28   :  { %v186_v8 = vand.u32 2147483647, %v601_v4  ;;  %v187_v9 = vsub.f32 0.0, %v183_v5  ;;  %v607_v17 = vld [vmem:[#allocation5] sm:$0xff]  ;;  %v609_v18 = vld [vmem:[#allocation5 + $0x8] sm:$0xff]  ;;  %v611_v19 = vld [vmem:[#allocation5 + $0x10] sm:$0xff] }
  0x29   :  { %v188_v10 = vsub.f32 0.0, %v184_v6  ;;  %v189_v11 = vsub.f32 0.0, %v185_v7  ;;  %vm264_vm1 = vcmask 130048   ;;  %v613_v20 = vld [vmem:[#allocation5 + $0x18] sm:$0xff]  ;;  %v179_v26 = vld [vmem:[#allocation7] sm:$0xff]  ;;  %v180_v27 = vld [vmem:[#allocation7 + $0x8] sm:$0xff] }
  0x2a   :  { %v190_v12 = vsub.f32 0.0, %v186_v8  ;;  %v191_v13 = vmul.f32 1.442695, %v187_v9  ;;  %v349_v21 = vsel %vm264_vm1, %v607_v17, 0.0  ;;  %v350_v22 = vsel %vm264_vm1, %v609_v18, 0.0  ;;  %v181_v29 = vld [vmem:[#allocation7 + $0x10] sm:$0xff] }
  0x2b   :  { %v193_v14 = vmul.f32 1.442695, %v188_v10  ;;  %v195_v15 = vmul.f32 1.442695, %v189_v11  ;;  %v358_v23 = vsel %vm264_vm1, %v611_v19, 0.0  ;;  %v351_v24 = vadd.f32 %v350_v22, %v349_v21  ;;  %v182_v30 = vld [vmem:[#allocation7 + $0x18] sm:$0xff] }
  0x2c   :  { %508 = vpow2.f32 %v191_v13  ;;  %v197_v16 = vmul.f32 1.442695, %v190_v12  ;;  %v359_v25 = vsel %vm264_vm1, %v613_v20, 0.0  ;;  %vm243_vm2 = vcmp.gt.f32.partialorder %v595_v1, 0.0 }
  0x2d   :  { %510 = vpow2.f32 %v193_v14  ;;  %v360_v28 = vadd.f32 %v359_v25, %v358_v23  ;;  %vm244_vm3 = vcmp.gt.f32.partialorder %v597_v2, 0.0  ;;  %vm245_vm4 = vcmp.gt.f32.partialorder %v599_v3, 0.0  ;;  %v348_v10 = vld [vmem:[#allocation2 + $0x6] sm:$0x3] }
  0x2e   :  { %512 = vpow2.f32 %v195_v15  ;;  %vm246_vm5 = vcmp.gt.f32.partialorder %v601_v4, 0.0  ;;  %v352_v31 = vrot.slane %v351_v24, 4  ;;  %v479_v32 = vsel %vm243_vm2, 1.0, %v560_v0 }
  0x2f   :  { %514 = vpow2.f32 %v197_v16  ;;  %v480_v33 = vsel %vm244_vm3, 1.0, %v560_v0  ;;  %v481_v34 = vsel %vm245_vm4, 1.0, %v560_v0  ;;  %v361_v35 = vrot.slane %v360_v28, 4 }
  0x30   :  { %v482_v36 = vsel %vm246_vm5, 1.0, %v560_v0  ;;  %v255_v37 = vsub.f32 %v479_v32, %v179_v26  ;;  %v256_v38 = vsub.f32 %v480_v33, %v180_v27  ;;  %v353_v39 = vadd.f32 %v352_v31, %v351_v24 }
  0x31   :  { %v257_v40 = vsub.f32 %v481_v34, %v181_v29  ;;  %v258_v41 = vsub.f32 %v482_v36, %v182_v30  ;;  %v362_v42 = vadd.f32 %v361_v35, %v360_v28  ;;  %vm285_vm6 = vcmask 1041409  }
  0x32   :  { %v259_v43 = vmax.f32 %v255_v37, 0.0  ;;  %v260_v44 = vmax.f32 %v256_v38, 0.0  ;;  %v354_v45 = vrot.slane %v353_v39, 2  ;;  %v211_v0 = vmax.f32 %v595_v1, 0.0 }
  0x33   :  { %v261_v46 = vmax.f32 %v257_v40, 0.0  ;;  %v363_v48 = vrot.slane %v362_v42, 2  ;;  %v262_v54 = vmax.f32 %v258_v41, 0.0  ;;  %v215_v9 = vmul.f32 %v607_v17, %v595_v1 }
  0x34   :  { %v375_v49 = vsel %vm264_vm1, %v259_v43, 0.0  ;;  %v376_v50 = vsel %vm264_vm1, %v260_v44, 0.0  ;;  %v355_v53 = vadd.f32 %v354_v45, %v353_v39  ;;  %v212_v13 = vmax.f32 %v597_v2, 0.0 }
  0x35   :  { %v377_v55 = vadd.f32 %v376_v50, %v375_v49  ;;  %v364_v58 = vadd.f32 %v363_v48, %v362_v42  ;;  %v384_v62 = vsel %vm264_vm1, %v261_v46, 0.0  ;;  %v385_v8 = vsel %vm264_vm1, %v262_v54, 0.0 }
  0x36   :  { %v627_v47 = vpop.eup %508  ;;  %v356_v61 = vrot.slane %v355_v53, 1  ;;  %v386_v12 = vadd.f32 %v385_v8, %v384_v62  ;;  %v216_v14 = vmul.f32 %v609_v18, %v597_v2  ;;  %v213_v16 = vmax.f32 %v599_v3, 0.0 }
  0x37   :  { %v631_v51 = vpop.eup %510  ;;  %v199_v52 = vadd.f32 1.0, %v627_v47  ;;  %v365_v5 = vrot.slane %v364_v58, 1  ;;  %v378_v7 = vrot.slane %v377_v55, 4  ;;  %v217_v23 = vmul.f32 %v611_v19, %v599_v3 }
  0x38   :  { %v634_v56 = vpop.eup %512  ;;  %v200_v57 = vadd.f32 1.0, %v631_v51  ;;  %v357_v6 = vadd.f32 %v356_v61, %v355_v53  ;;  %v387_v22 = vrot.slane %v386_v12, 4  ;;  %v214_v27 = vmax.f32 %v601_v4, 0.0 }
  0x39   :  { %v515_v59 = vpop.eup %514  ;;  %v201_v60 = vadd.f32 1.0, %v634_v56  ;;  %516 = vlog2.f32 %v199_v52  ;;  %v366_v11 = vadd.f32 %v365_v5, %v364_v58  ;;  %v379_v15 = vadd.f32 %v378_v7, %v377_v55 }
  0x3a   :  { %v202_v63 = vadd.f32 1.0, %v515_v59  ;;  %518 = vlog2.f32 %v200_v57  ;;  %v388_v26 = vadd.f32 %v387_v22, %v386_v12  ;;  %v218_v28 = vmul.f32 %v613_v20, %v601_v4 }
  0x3b   :  { %520 = vlog2.f32 %v201_v60  ;;  %v369_v21 = vsel %vm285_vm6, %v366_v11, %v357_v6  ;;  %v380_v25 = vrot.slane %v379_v15, 2  ;;  %v219_v30 = vsub.f32 %v211_v0, %v215_v9 }
  0x3c   :  { %522 = vlog2.f32 %v202_v63  ;;  %v371_v24 = vadd.f32 %v369_v21, %v348_v10  ;;  %vm227_vm7 = vcmp.ge.f32.partialorder %v595_v1, 0.0  ;;  %v389_v31 = vrot.slane %v388_v26, 2 }
  0x3d   :  { %524 = vrcp.f32 %v199_v52  ;;  %v381_v29 = vadd.f32 %v380_v25, %v379_v15  ;;  %v220_v33 = vsub.f32 %v212_v13, %v216_v14  ;;  %v221_v34 = vsub.f32 %v213_v16, %v217_v23 }
  0x3e   :  { %526 = vrcp.f32 %v200_v57  ;;  %372 = vst.msk [vmem:[#allocation2 + $0x6] sm:$0x3] %vm165_vm0, %v371_v24  ;;  %vm228_vm8 = vcmp.ge.f32.partialorder %v597_v2, 0.0  ;;  %vm229_vm9 = vcmp.ge.f32.partialorder %v599_v3, 0.0  ;;  %vm230_vm10 = vcmp.ge.f32.partialorder %v601_v4, 0.0 }
  0x3f   :  { %528 = vrcp.f32 %v201_v60  ;;  %v382_v37 = vrot.slane %v381_v29, 1  ;;  %v390_v38 = vadd.f32 %v389_v31, %v388_v26  ;;  %v222_v41 = vsub.f32 %v214_v27, %v218_v28 }
  0x40   :  { %530 = vrcp.f32 %v202_v63  ;;  %v231_v42 = vsel %vm227_vm7, 1.0, %v627_v47  ;;  %v232_v45 = vsel %vm228_vm8, 1.0, %v631_v51  ;;  %v233_v50 = vsel %vm229_vm9, 1.0, %v634_v56 }
  0x41   :  { %v391_v46 = vrot.slane %v390_v38, 1  ;;  %v234_v52 = vsel %vm230_vm10, 1.0, %v515_v59  ;;  %v383_v57 = vadd.f32 %v382_v37, %v381_v29  ;;  %vm450_vm11 = vcmask 1042434  }
  0x42   :  { %vm452_vm12 = vcmask 1043459   ;;  %vm454_vm13 = vcmask 1044484   ;;  %vm457_vm14 = vcmask 12288  }
  0x43   :  { %v517_v32 = vpop.eup %516  ;;  %v392_v62 = vadd.f32 %v391_v46, %v390_v38 }
  0x44   :  { %v519_v35 = vpop.eup %518  ;;  %v204_v36 = vmul.f32 0.6931472, %v517_v32 }
  0x45   :  { %v521_v39 = vpop.eup %520  ;;  %v206_v40 = vmul.f32 0.6931472, %v519_v35 }
  0x46   :  { %v523_v1 = vpop.eup %522  ;;  %v208_v43 = vmul.f32 0.6931472, %v521_v39  ;;  %v223_v44 = vadd.f32 %v219_v30, %v204_v36  ;;  %v374_v30 = vld [vmem:[#allocation2 + $0x8] sm:$0x3] }
  0x47   :  { %v525_v2 = vpop.eup %524  ;;  %v210_v48 = vmul.f32 0.6931472, %v523_v1  ;;  %v224_v49 = vadd.f32 %v220_v33, %v206_v40 }
  0x48   :  { %v527_v53 = vpop.eup %526  ;;  %v225_v54 = vadd.f32 %v221_v34, %v208_v43  ;;  %v265_v47 = vsel %vm264_vm1, %v223_v44, 0.0  ;;  %v236_v55 = vmul.f32 %v525_v2, %v231_v42 }
  0x49   :  { %v529_v58 = vpop.eup %528  ;;  %v226_v60 = vadd.f32 %v222_v41, %v210_v48  ;;  %v266_v51 = vsel %vm264_vm1, %v224_v49, 0.0  ;;  %v238_v61 = vmul.f32 %v527_v53, %v232_v45 }
  0x4a   :  { %v531_v63 = vpop.eup %530  ;;  %v267_v0 = vadd.f32 %v266_v51, %v265_v47  ;;  %v274_v3 = vsel %vm264_vm1, %v225_v54, 0.0  ;;  %v240_v56 = vmul.f32 %v529_v58, %v233_v50  ;;  %v323_v4 = vsel %vm264_vm1, %v236_v55, 0.0  ;;  %v263_v50 = vld [vmem:[#allocation2] sm:$0x3]  ;;  %v322_v58 = vld [vmem:[#allocation2 + $0x4] sm:$0x3] }
  0x4b   :  { %v275_v59 = vsel %vm264_vm1, %v226_v60, 0.0  ;;  %v242_v5 = vmul.f32 %v531_v63, %v234_v52  ;;  %v324_v6 = vsel %vm264_vm1, %v238_v61, 0.0  ;;  %v293_v7 = vmul.f32 %v236_v55, %v607_v17 }
  0x4c   :  { %v268_v8 = vrot.slane %v267_v0, 4  ;;  %v276_v9 = vadd.f32 %v275_v59, %v274_v3  ;;  %v325_v10 = vadd.f32 %v324_v6, %v323_v4  ;;  %v332_v11 = vsel %vm264_vm1, %v240_v56, 0.0  ;;  %v292_v3 = vld [vmem:[#allocation2 + $0x2] sm:$0x3] }
  0x4d   :  { %v333_v12 = vsel %vm264_vm1, %v242_v5, 0.0  ;;  %v294_v13 = vmul.f32 %v238_v61, %v609_v18  ;;  %v295_v14 = vmul.f32 %v240_v56, %v611_v19  ;;  %v296_v15 = vmul.f32 %v242_v5, %v613_v20 }
  0x4e   :  { %v269_v16 = vadd.f32 %v268_v8, %v267_v0  ;;  %v277_v21 = vrot.slane %v276_v9, 4  ;;  %v326_v22 = vrot.slane %v325_v10, 4  ;;  %v334_v23 = vadd.f32 %v333_v12, %v332_v11 }
  0x4f   :  { %v297_v24 = vsel %vm264_vm1, %v293_v7, 0.0  ;;  %v298_v17 = vsel %vm264_vm1, %v294_v13, 0.0  ;;  %v306_v25 = vsel %vm264_vm1, %v295_v14, 0.0  ;;  %v307_v26 = vsel %vm264_vm1, %v296_v15, 0.0 }
  0x50   :  { %v270_v27 = vrot.slane %v269_v16, 2  ;;  %v278_v28 = vadd.f32 %v277_v21, %v276_v9  ;;  %v327_v29 = vadd.f32 %v326_v22, %v325_v10  ;;  %v335_v18 = vrot.slane %v334_v23, 4  ;;  %v405_v9 = vld [vmem:[#allocation2 + $0x6] sm:$0x3] }
  0x51   :  { %v299_v19 = vadd.f32 %v298_v17, %v297_v24  ;;  %v308_v31 = vadd.f32 %v307_v26, %v306_v25  ;;  %v395_v20 = vsel %vm285_vm6, %v392_v62, %v383_v57  ;;  %v416_v12 = vsel %vm165_vm0, %v405_v9, 0.0 }
  0x52   :  { %v271_v32 = vadd.f32 %v270_v27, %v269_v16  ;;  %v279_v33 = vrot.slane %v278_v28, 2  ;;  %v328_v34 = vrot.slane %v327_v29, 2  ;;  %v336_v35 = vadd.f32 %v335_v18, %v334_v23 }
  0x53   :  { %v300_v36 = vrot.slane %v299_v19, 4  ;;  %v309_v37 = vrot.slane %v308_v31, 4  ;;  %v397_v38 = vadd.f32 %v395_v20, %v374_v30  ;;  %v427_v16 = vlaneseq }
  0x54   :  { %v272_v39 = vrot.slane %v271_v32, 1  ;;  %v280_v40 = vadd.f32 %v279_v33, %v278_v28  ;;  %v329_v41 = vadd.f32 %v328_v34, %v327_v29  ;;  %v337_v42 = vrot.slane %v336_v35, 2 }
  0x55   :  { %v301_v1 = vadd.f32 %v300_v36, %v299_v19  ;;  %v310_v43 = vadd.f32 %v309_v37, %v308_v31  ;;  %398 = vst.msk [vmem:[#allocation2 + $0x8] sm:$0x3] %vm165_vm0, %v397_v38  ;;  %v428_v21 = vand.u32 127, %v427_v16  ;;  %v430_v22 = vshrl.u32 %v427_v16, 7 }
  0x56   :  { %v273_v44 = vadd.f32 %v272_v39, %v271_v32  ;;  %v281_v45 = vrot.slane %v280_v40, 1  ;;  %v330_v46 = vrot.slane %v329_v41, 1  ;;  %v338_v2 = vadd.f32 %v337_v42, %v336_v35 }
  0x57   :  { %v302_v48 = vrot.slane %v301_v1, 2  ;;  %v311_v49 = vrot.slane %v310_v43, 2  ;;  %v431_v24 = vsub.s32 %v428_v21, %v430_v22 }
  0x58   :  { %v282_v52 = vadd.f32 %v281_v45, %v280_v40  ;;  %v331_v53 = vadd.f32 %v330_v46, %v329_v41  ;;  %v339_v54 = vrot.slane %v338_v2, 1 }
  0x59   :  { %v303_v47 = vadd.f32 %v302_v48, %v301_v1  ;;  %v312_v55 = vadd.f32 %v311_v49, %v310_v43 }
  0x5a   :  { %v286_v57 = vsel %vm285_vm6, %v282_v52, %v273_v44  ;;  %v340_v60 = vadd.f32 %v339_v54, %v338_v2 }
  0x5b   :  { %v288_v51 = vadd.f32 %v286_v57, %v263_v50  ;;  %v304_v61 = vrot.slane %v303_v47, 1  ;;  %v313_v62 = vrot.slane %v312_v55, 1 }
  0x5c   :  { %v343_v63 = vsel %vm285_vm6, %v340_v60, %v331_v53  ;;  %v406_v13 = vld [vmem:[#allocation2 + $0x8] sm:$0x3] }
  0x5d   :  { %290 = vst.msk [vmem:[#allocation2] sm:$0x3] %vm165_vm0, %v288_v51  ;;  %v345_v0 = vadd.f32 %v343_v63, %v322_v58  ;;  %v305_v56 = vadd.f32 %v304_v61, %v303_v47  ;;  %v314_v4 = vadd.f32 %v313_v62, %v312_v55  ;;  %v419_v15 = vsel %vm165_vm0, %v406_v13, 0.0 }
  0x5f   :  { %346 = vst.msk [vmem:[#allocation2 + $0x4] sm:$0x3] %vm165_vm0, %v345_v0  ;;  %v317_v59 = vsel %vm285_vm6, %v314_v4, %v305_v56 }
  0x60   :  { %v319_v5 = vadd.f32 %v317_v59, %v292_v3 }
  0x62   :  { %320 = vst.msk [vmem:[#allocation2 + $0x2] sm:$0x3] %vm165_vm0, %v319_v5 }
  0x64   :  { %v402_v6 = vld [vmem:[#allocation2] sm:$0x3] }
  0x65   :  { %v407_v7 = vsel %vm165_vm0, %v402_v6, 0.0 }
  0x66   :  { %408 = vadd.xlane.f32.xlu0 %v407_v7  ;;  %v404_v8 = vld [vmem:[#allocation2 + $0x4] sm:$0x3] }
  0x67   :  { %v413_v10 = vsel %vm165_vm0, %v404_v8, 0.0 }
  0x68   :  { %414 = vadd.xlane.f32.xlu1 %v413_v10 }
  0x69   :  { %v403_v11 = vld [vmem:[#allocation2 + $0x2] sm:$0x3] }
  0x6a   :  { %v410_v14 = vsel %vm165_vm0, %v403_v11, 0.0 }
  0x6b   :  { %411 = vadd.xlane.f32.xlu0 %v410_v14 }
  0x6c   :  { %417 = vadd.xlane.f32.xlu1 %v416_v12 }
  0x6f   :  { %420 = vadd.xlane.f32.xlu0 %v419_v15 }
  0xf3   :  { %v409_v23 = vpop.xlane.xlu0 %408 }
  0xf4   :  { %v432_v26 = vrot.slane %v409_v23, %v431_v24 }
  0xf5   :  { %v415_v17 = vpop.xlane.xlu1 %414 }
  0xf6   :  { %v440_v29 = vrot.slane %v415_v17, %v431_v24 }
  0xf8   :  { %v412_v25 = vpop.xlane.xlu0 %411 }
  0xf9   :  { %v436_v27 = vrot.slane %v412_v25, %v431_v24  ;;  %v418_v28 = vpop.xlane.xlu1 %417 }
  0xfa   :  { %v444_v18 = vrot.slane %v418_v28, %v431_v24 }
  0xfb   :  { %v449_v30 = vsel %vm285_vm6, %v436_v27, %v432_v26 }
  0xfc   :  { %v451_v19 = vsel %vm450_vm11, %v440_v29, %v449_v30  ;;  %v421_v31 = vpop.xlane.xlu0 %420 }
  0xfd   :  { %v453_v20 = vsel %vm452_vm12, %v444_v18, %v451_v19  ;;  %v448_v32 = vrot.slane %v421_v31, %v431_v24 }
  0xff   :  { %v455_v33 = vsel %vm454_vm13, %v448_v32, %v453_v20 }
 0x100   :  { %458 = vst.msk [vmem:[%s701_s3] sm:$0x1f] %vm457_vm14, %v455_v33 }
 0x101   :  { %463 = vsyncpa [#allocation4], 1 }
 0x102   :  { %464 = vsyncpa [#allocation6], 1 }

</bundles_post_ra>
